<compile_context>
chip_gen: v7x
topology: tpu7x:2x2x1
jax: 0.10.0
libtpu: 0.0.40
codegen_flags: <defaults>
</compile_context>

<pallas_src>
import jax
import jax.numpy as jnp
from jax.experimental import pallas as pl
from jax.experimental.pallas import tpu as pltpu

D_IN, D_H1, D_H2, D_OUT = 25, 64, 32, 14


def mlp_kernel(x_ref, w1_ref, b1_ref, w2_ref, b2_ref, w3_ref, b3_ref, o_ref):
    # x_ref: [25, TILE_B] bf16 (batch on lanes). Weights are [out, in] bf16,
    # biases [out, 1] f32. All matmuls accumulate in f32 on the MXU.
    x = x_ref[...]
    h1 = jnp.dot(w1_ref[...], x, preferred_element_type=jnp.float32)      # [64, TILE_B]
    h1 = jnp.maximum(h1 + b1_ref[...], 0.0)
    h2 = jnp.dot(w2_ref[...], h1.astype(jnp.bfloat16),
                 preferred_element_type=jnp.float32)                      # [32, TILE_B]
    h2 = jnp.maximum(h2 + b2_ref[...], 0.0)
    z = jnp.dot(w3_ref[...], h2.astype(jnp.bfloat16),
                preferred_element_type=jnp.float32)                       # [14, TILE_B]
    z = z + b3_ref[...]
    # sigmoid(z) = 1 / (1 + exp(-z)); exp -> EUP, approx reciprocal -> EUP.
    o_ref[...] = pl.reciprocal(1.0 + jnp.exp(-z), approx=True)


def _round_up(n, m):
    return ((n + m - 1) // m) * m


def suicide_risk_mlp_forward(x, params, tile_b=2048):
    """x: [B, 25] float32. Returns [B, 14] float32 sigmoid probabilities."""
    B = x.shape[0]
    # TILE_B: multiple of 128 (lane-dense), capped by the (padded) batch.
    # 2048 keeps double-buffered x/out tiles well under v7x's 64 MiB VMEM.
    tile_b = min(tile_b, _round_up(B, 128))
    b_pad = _round_up(B, tile_b)

    # Weights in PyTorch [out, in] convention, cast to bf16 for the MXU.
    w1 = params["w1"].astype(jnp.bfloat16)
    w2 = params["w2"].astype(jnp.bfloat16)
    w3 = params["w3"].astype(jnp.bfloat16)
    # Biases as [out, 1] f32: broadcast over the lane (batch) axis in-kernel.
    b1 = params["b1"].reshape(D_H1, 1).astype(jnp.float32)
    b2 = params["b2"].reshape(D_H2, 1).astype(jnp.float32)
    b3 = params["b3"].reshape(D_OUT, 1).astype(jnp.float32)

    # Pad batch, flip to feature-major so batch sits on the lane axis.
    x_t = jnp.pad(x, ((0, b_pad - B), (0, 0))).T.astype(jnp.bfloat16)     # [25, b_pad]

    grid = (b_pad // tile_b,)
    flops = 2 * b_pad * (D_IN * D_H1 + D_H1 * D_H2 + D_H2 * D_OUT)
    bytes_accessed = (x_t.size * 2                       # bf16 x in
                      + b_pad * D_OUT * 4                # f32 out
                      + (w1.size + w2.size + w3.size) * 2
                      + (b1.size + b2.size + b3.size) * 4)

    out_t = pl.pallas_call(
        mlp_kernel,
        out_shape=jax.ShapeDtypeStruct((D_OUT, b_pad), jnp.float32),
        grid=grid,
        in_specs=[
            pl.BlockSpec((D_IN, tile_b), lambda i: (0, i)),   # x tile, batch-tiled
            pl.BlockSpec(w1.shape, lambda i: (0, 0)),         # full weights, resident
            pl.BlockSpec(b1.shape, lambda i: (0, 0)),
            pl.BlockSpec(w2.shape, lambda i: (0, 0)),
            pl.BlockSpec(b2.shape, lambda i: (0, 0)),
            pl.BlockSpec(w3.shape, lambda i: (0, 0)),
            pl.BlockSpec(b3.shape, lambda i: (0, 0)),
        ],
        out_specs=pl.BlockSpec((D_OUT, tile_b), lambda i: (0, i)),
        compiler_params=pltpu.CompilerParams(
            dimension_semantics=("parallel",)),               # 2-TC shard on v7x
        cost_estimate=pl.CostEstimate(
            flops=flops,
            transcendentals=b_pad * D_OUT,
            bytes_accessed=bytes_accessed),
    )(x_t, w1, b1, w2, b2, w3, b3)

    # Back to the PyTorch [B, out] convention, dropping the pad rows.
    return out_t.T[:B]


def init_params(key):
    """Deterministic init mimicking PyTorch nn.Linear default:
    uniform(-1/sqrt(fan_in), 1/sqrt(fan_in)); weights stored [out, in]."""
    dims = [(D_IN, D_H1), (D_H1, D_H2), (D_H2, D_OUT)]
    params = {}
    for idx, (fan_in, fan_out) in enumerate(dims, start=1):
        key, kw, kb = jax.random.split(key, 3)
        bound = 1.0 / jnp.sqrt(jnp.float32(fan_in))
        params[f"w{idx}"] = jax.random.uniform(
            kw, (fan_out, fan_in), jnp.float32, minval=-bound, maxval=bound)
        params[f"b{idx}"] = jax.random.uniform(
            kb, (fan_out,), jnp.float32, minval=-bound, maxval=bound)
    return params


def reference_forward(x, params):
    """Pure-JAX reference mirroring the kernel's bf16 casts (f32 accumulate)."""
    def bf(a):
        return a.astype(jnp.bfloat16).astype(jnp.float32)
    h1 = jnp.maximum(bf(x) @ bf(params["w1"]).T + params["b1"], 0.0)
    h2 = jnp.maximum(bf(h1) @ bf(params["w2"]).T + params["b2"], 0.0)
    z = bf(h2) @ bf(params["w3"]).T + params["b3"]
    return jax.nn.sigmoid(z)


if __name__ == "__main__":
    key = jax.random.PRNGKey(0)
    key, kx = jax.random.split(key)
    batch = 8
    x = jax.random.normal(kx, (batch, D_IN), jnp.float32)
    params = init_params(key)

    out = suicide_risk_mlp_forward(x, params)
    out = jax.block_until_ready(out)

    ref = reference_forward(x, params)
    assert out.shape == (batch, D_OUT), out.shape
    # bf16 matmuls + approx reciprocal: compare at a correspondingly loose tol.
    assert jnp.allclose(out, ref, atol=1e-2, rtol=1e-2), "mismatch vs reference"
    print("KERNEL_OK")
</pallas_src>

<mosaic_0001>
module attributes {stable_mosaic.version = 11 : i64} {
  func.func @mlp_kernel(%arg0: i32, %arg1: memref<25x128xbf16, #tpu.memory_space<vmem>>, %arg2: memref<64x25xbf16, #tpu.memory_space<vmem>>, %arg3: memref<64x1xf32, #tpu.memory_space<vmem>>, %arg4: memref<32x64xbf16, #tpu.memory_space<vmem>>, %arg5: memref<32x1xf32, #tpu.memory_space<vmem>>, %arg6: memref<14x32xbf16, #tpu.memory_space<vmem>>, %arg7: memref<14x1xf32, #tpu.memory_space<vmem>>, %arg8: memref<14x128xf32, #tpu.memory_space<vmem>>) attributes {dimension_semantics = [#tpu.dimension_semantics<parallel>], iteration_bounds = array<i64: 1>, scalar_prefetch = 0 : i64, scratch_operands = 0 : i64, tpu.core_type = #tpu.core_type<tc>, window_params = [{transform_indices = @transform_0, window_bounds = array<i64: 25, 128>}, {pipeline_mode = #tpu.pipeline_mode<synchronous>, transform_indices = @transform_1, window_bounds = array<i64: 64, 25>}, {pipeline_mode = #tpu.pipeline_mode<synchronous>, transform_indices = @transform_2, window_bounds = array<i64: 64, 1>}, {pipeline_mode = #tpu.pipeline_mode<synchronous>, transform_indices = @transform_3, window_bounds = array<i64: 32, 64>}, {pipeline_mode = #tpu.pipeline_mode<synchronous>, transform_indices = @transform_4, window_bounds = array<i64: 32, 1>}, {pipeline_mode = #tpu.pipeline_mode<synchronous>, transform_indices = @transform_5, window_bounds = array<i64: 14, 32>}, {pipeline_mode = #tpu.pipeline_mode<synchronous>, transform_indices = @transform_6, window_bounds = array<i64: 14, 1>}, {transform_indices = @transform_7, window_bounds = array<i64: 14, 128>}]} {
    %c0 = arith.constant 0 : index
    %c0_0 = arith.constant 0 : index
    %0 = vector.load %arg1[%c0, %c0_0] : memref<25x128xbf16, #tpu.memory_space<vmem>>, vector<25x128xbf16>
    %c0_1 = arith.constant 0 : index
    %c0_2 = arith.constant 0 : index
    %1 = vector.load %arg2[%c0_1, %c0_2] : memref<64x25xbf16, #tpu.memory_space<vmem>>, vector<64x25xbf16>
    %cst = arith.constant dense<0.000000e+00> : vector<64x128xf32>
    %2 = tpu.matmul %1, %0, %cst {dimension_numbers = #tpu.dot_dimension_numbers<[1], [0], [0], [1], [0, 0, 1, 1], [], []>} : vector<64x25xbf16>, vector<25x128xbf16>, vector<64x128xf32> -> vector<64x128xf32>
    %c0_3 = arith.constant 0 : index
    %c0_4 = arith.constant 0 : index
    %3 = vector.load %arg3[%c0_3, %c0_4] : memref<64x1xf32, #tpu.memory_space<vmem>>, vector<64x1xf32>
    %4 = vector.broadcast %3 : vector<64x1xf32> to vector<64x128xf32>
    %5 = arith.addf %2, %4 : vector<64x128xf32>
    %cst_5 = arith.constant 0.000000e+00 : f32
    %6 = vector.broadcast %cst_5 : f32 to vector<64x128xf32>
    %7 = arith.maximumf %5, %6 : vector<64x128xf32>
    %c0_6 = arith.constant 0 : index
    %c0_7 = arith.constant 0 : index
    %8 = vector.load %arg4[%c0_6, %c0_7] : memref<32x64xbf16, #tpu.memory_space<vmem>>, vector<32x64xbf16>
    %9 = arith.truncf %7 : vector<64x128xf32> to vector<64x128xbf16>
    %cst_8 = arith.constant dense<0.000000e+00> : vector<32x128xf32>
    %10 = tpu.matmul %8, %9, %cst_8 {dimension_numbers = #tpu.dot_dimension_numbers<[1], [0], [0], [1], [0, 0, 1, 1], [], []>} : vector<32x64xbf16>, vector<64x128xbf16>, vector<32x128xf32> -> vector<32x128xf32>
    %c0_9 = arith.constant 0 : index
    %c0_10 = arith.constant 0 : index
    %11 = vector.load %arg5[%c0_9, %c0_10] : memref<32x1xf32, #tpu.memory_space<vmem>>, vector<32x1xf32>
    %12 = vector.broadcast %11 : vector<32x1xf32> to vector<32x128xf32>
    %13 = arith.addf %10, %12 : vector<32x128xf32>
    %cst_11 = arith.constant 0.000000e+00 : f32
    %14 = vector.broadcast %cst_11 : f32 to vector<32x128xf32>
    %15 = arith.maximumf %13, %14 : vector<32x128xf32>
    %c0_12 = arith.constant 0 : index
    %c0_13 = arith.constant 0 : index
    %16 = vector.load %arg6[%c0_12, %c0_13] : memref<14x32xbf16, #tpu.memory_space<vmem>>, vector<14x32xbf16>
    %17 = arith.truncf %15 : vector<32x128xf32> to vector<32x128xbf16>
    %cst_14 = arith.constant dense<0.000000e+00> : vector<14x128xf32>
    %18 = tpu.matmul %16, %17, %cst_14 {dimension_numbers = #tpu.dot_dimension_numbers<[1], [0], [0], [1], [0, 0, 1, 1], [], []>} : vector<14x32xbf16>, vector<32x128xbf16>, vector<14x128xf32> -> vector<14x128xf32>
    %c0_15 = arith.constant 0 : index
    %c0_16 = arith.constant 0 : index
    %19 = vector.load %arg7[%c0_15, %c0_16] : memref<14x1xf32, #tpu.memory_space<vmem>>, vector<14x1xf32>
    %20 = vector.broadcast %19 : vector<14x1xf32> to vector<14x128xf32>
    %21 = arith.addf %18, %20 : vector<14x128xf32>
    %cst_17 = arith.constant 0.000000e+00 : f32
    %22 = vector.broadcast %cst_17 : f32 to vector<14x128xf32>
    %23 = arith.subf %22, %21 : vector<14x128xf32>
    %24 = math.exp %23 : vector<14x128xf32>
    %cst_18 = arith.constant 1.000000e+00 : f32
    %25 = vector.broadcast %cst_18 : f32 to vector<14x128xf32>
    %26 = arith.addf %25, %24 : vector<14x128xf32>
    %27 = tpu.reciprocal %26 {approx = true} : vector<14x128xf32> -> vector<14x128xf32>
    %c0_19 = arith.constant 0 : index
    %c0_20 = arith.constant 0 : index
    %28 = vector.load %arg8[%c0_19, %c0_20] : memref<14x128xf32, #tpu.memory_space<vmem>>, vector<14x128xf32>
    tpu.vector_store %arg8[%c0_19, %c0_20], %27 {strides = array<i32>} : memref<14x128xf32, #tpu.memory_space<vmem>>, vector<14x128xf32>,
    return
  }
  func.func @transform_0(%arg0: i32) -> (i32, i32) {
    %c0_i32 = arith.constant 0 : i32
    %c0_i32_0 = arith.constant 0 : i32
    return %c0_i32, %arg0 : i32, i32
  }
  func.func @transform_1(%arg0: i32) -> (i32, i32) {
    %c0_i32 = arith.constant 0 : i32
    %c0_i32_0 = arith.constant 0 : i32
    %c0_i32_1 = arith.constant 0 : i32
    return %c0_i32, %c0_i32_0 : i32, i32
  }
  func.func @transform_2(%arg0: i32) -> (i32, i32) {
    %c0_i32 = arith.constant 0 : i32
    %c0_i32_0 = arith.constant 0 : i32
    %c0_i32_1 = arith.constant 0 : i32
    return %c0_i32, %c0_i32_0 : i32, i32
  }
  func.func @transform_3(%arg0: i32) -> (i32, i32) {
    %c0_i32 = arith.constant 0 : i32
    %c0_i32_0 = arith.constant 0 : i32
    %c0_i32_1 = arith.constant 0 : i32
    return %c0_i32, %c0_i32_0 : i32, i32
  }
  func.func @transform_4(%arg0: i32) -> (i32, i32) {
    %c0_i32 = arith.constant 0 : i32
    %c0_i32_0 = arith.constant 0 : i32
    %c0_i32_1 = arith.constant 0 : i32
    return %c0_i32, %c0_i32_0 : i32, i32
  }
  func.func @transform_5(%arg0: i32) -> (i32, i32) {
    %c0_i32 = arith.constant 0 : i32
    %c0_i32_0 = arith.constant 0 : i32
    %c0_i32_1 = arith.constant 0 : i32
    return %c0_i32, %c0_i32_0 : i32, i32
  }
  func.func @transform_6(%arg0: i32) -> (i32, i32) {
    %c0_i32 = arith.constant 0 : i32
    %c0_i32_0 = arith.constant 0 : i32
    %c0_i32_1 = arith.constant 0 : i32
    return %c0_i32, %c0_i32_0 : i32, i32
  }
  func.func @transform_7(%arg0: i32) -> (i32, i32) {
    %c0_i32 = arith.constant 0 : i32
    %c0_i32_0 = arith.constant 0 : i32
    return %c0_i32, %arg0 : i32, i32
  }
}

</mosaic_0001>

<bundles_post_ra>
// kernel: tpu_custom_call.1
= control target key start
LH: loop header
LB: loop body
LE: loop exit
PB: predicated region body
PF: predicated region fallthrough
CT: control target
= control target key end

     0   :  { %vm132_vm0 = vcmask 1043456   ;;  %vm133_vm1 = vcmask 1044480   ;;  %v521_v2 = vmov 65535   ;;  %vm119_vm2 = vcmask 203776   ;;  %s655_s0 = inlined_call_operand.vmem [shape: bf16[25,128], index: 0, kind: input, shape index: {}]   ;;  %s656_s1 = inlined_call_operand.vmem [shape: bf16[64,25], index: 1, kind: input, shape index: {}]   ;;  %s657_s2 = inlined_call_operand.vmem [shape: f32[64,1], index: 2, kind: input, shape index: {}]   ;;  %s658_s3 = inlined_call_operand.vmem [shape: bf16[32,64], index: 3, kind: input, shape index: {}]   ;;  %s659_s4 = inlined_call_operand.vmem [shape: f32[32,1], index: 4, kind: input, shape index: {}]   ;;  %s660_s5 = inlined_call_operand.vmem [shape: bf16[14,32], index: 5, kind: input, shape index: {}]   ;;  %s661_s6 = inlined_call_operand.vmem [shape: f32[14,1], index: 6, kind: input, shape index: {}]   ;;  %s662_s7 = inlined_call_operand.hbm [shape: f32[14,128], index: 7, kind: output, shape index: {}]  }
   0x1   :  { %v480_v0 = vld [vmem:[%s655_s0] sm:$0xff]   ;;  %v481_v1 = vld [vmem:[%s655_s0 + $0x8] sm:$0x1f]   ;;  %v134_v3 = vsel %vm132_vm0, 4294967295, %v521_v2  ;;  %v522_v9 = vmov 0   ;;  %v42_v10 = vld [vmem:[%s657_s2 + $0x10] sm:$0xff] }
   0x2   :  { %439 = vmatprep.subr.bf16.mxu0 %v480_v0  ;;  %v482_v4 = vld [vmem:[%s656_s1] sm:$0xff]   ;;  %v135_v5 = vsel %vm133_vm1, %v134_v3, 0  ;;  %v483_v8 = vld [vmem:[%s656_s1 + $0x8] sm:$0xff]   ;;  %478 = vset.pattern.permute.xlu0 %v522_v9  ;;  %v484_v11 = vld [vmem:[%s656_s1 + $0x10] sm:$0xff]  }
   0x3   :  { %440 = vmatpush3.bf16.msra.mxu0 %v480_v0  ;;  %v137_v6 = vand.u32 %v481_v1, %v135_v5  ;;  %443 = vmatprep.mubr.msk.bf16.mxu0 %vm119_vm2, %v482_v4  ;;  %v40_v7 = vld [vmem:[%s657_s2] sm:$0xff]  ;;  %v41_v12 = vld [vmem:[%s657_s2 + $0x8] sm:$0xff]  ;;  %v43_v13 = vld [vmem:[%s657_s2 + $0x18] sm:$0xff] }
   0x4   :  { %50 = vperm.xlu0 %478, %v40_v7   ;;  %479 = vset.pattern.permute.xlu1 %v522_v9  ;;  %v44_v14 = vld [vmem:[%s657_s2 + $0x20] sm:$0xff] }
   0x5   :  { %441 = vmatprep.subr.bf16.mxu0 %v137_v6  ;;  %60 = vperm.xlu1 %479, %v42_v10  }
   0x7   :  { %442 = vmatpush3.bf16.msra.mxu0 %v137_v6 }
   0x8   :  { %55 = vperm.xlu0 %478, %v41_v12  }
   0xa   :  { %444 = vmatmul.mubr.msk.bf16.vlgmr.msra.gmra.mrb[0].mxu0 %vm119_vm2, %v483_v8 }
   0xb   :  { %447 = vmatprep.mubr.msk.bf16.mxu0 %vm119_vm2, %v484_v11 }
   0xc   :  { %12 = vsyncpa [#allocation3], 0  ;;  %65 = vperm.xlu1 %479, %v43_v13   ;;  %v485_v15 = vld [vmem:[%s656_s1 + $0x18] sm:$0xff]   ;;  %v45_v16 = vld [vmem:[%s657_s2 + $0x28] sm:$0xff]  ;;  %70 = vperm.xlu0 %478, %v44_v14   ;;  %vm254_vm3 = vcmask 523264   ;;  %v523_v63 = vmov 0.0  }
   0xd   :  { %v46_v17 = vld [vmem:[%s657_s2 + $0x30] sm:$0xff]  ;;  %v47_v18 = vld [vmem:[%s657_s2 + $0x38] sm:$0xff]  ;;  %v220_v19 = vld [vmem:[%s659_s4] sm:$0xff]  ;;  %463 = vmatprep.subr.bf16.mxu0 %v523_v63  ;;  %vm524_vm4 = vmmov 0   ;;  %vm335_vm5 = vcmask 261120  }
   0xe   :  { %v221_v20 = vld [vmem:[%s659_s4 + $0x8] sm:$0xff]  ;;  %v222_v21 = vld [vmem:[%s659_s4 + $0x10] sm:$0xff]  ;;  %v223_v22 = vld [vmem:[%s659_s4 + $0x18] sm:$0xff] }
   0xf   :  { %v318_v23 = vld [vmem:[%s661_s6] sm:$0xff]  ;;  %v319_v24 = vld [vmem:[%s661_s6 + $0x8] sm:$0x3f] }
  0x10   :  { %75 = vperm.xlu1 %479, %v45_v16   ;;  %80 = vperm.xlu0 %478, %v46_v17   ;;  %v486_v25 = vld [vmem:[%s658_s3] sm:$0xff]   ;;  %v487_v62 = vld [vmem:[%s658_s3 + $0x8] sm:$0xff]  }
  0x11   :  { %459 = vmatprep.mubr.msk.bf16.mxu1 %vm254_vm3, %v486_v25 }
  0x12   :  { %448 = vmatmul.mubr.msk.bf16.gmra.mrb[4].mxu0 %vm119_vm2, %v485_v15 }
  0x13   :  { %467 = vmatprep.mubr.msk.bf16.mxu0 %vm524_vm4, %v523_v63 }
  0x14   :  { %85 = vperm.xlu1 %479, %v47_v18   ;;  %226 = vperm.xlu0 %478, %v220_v19   ;;  %v488_v18 = vld [vmem:[%s660_s5] sm:$0x7f]   ;;  %s525_s5 = smov [#allocation2]  }
  0x15   :  { %s397_s17 = sshll.u32 %s525_s5, 4  ;;  %s398_s17 = int_to_ptr.vmem [resolvable:$true] %s397_s17 }
  0x16   :  { %s497_s18 = scalar_lea.vmem %s398_s17, 256  ;;  %p502_p1 = scmp.lt.s32.totalorder %s398_s17, %s398_s17 }
  0x17   :  { %p498_p0 = scmp.ne.s32.totalorder %s398_s17, %s497_s18  ;;  %p503_p2 = scmp.lt.s32.totalorder %s497_s18, %s497_s18 }
  0x18   :  { %231 = vperm.xlu1 %479, %v221_v20   ;;  %236 = vperm.xlu0 %478, %v222_v21  }
  0x19   :  { %p504_p3 = por %p503_p2, %p502_p1 }
  0x1b   :  { %p505_p4 = pnand %p504_p3, %p498_p0 }
  0x1c   :  { %241 = vperm.xlu1 %479, %v223_v22   ;;  %322 = vperm.xlu0 %478, %v318_v23  }
  0x20   :  { %327 = vperm.xlu1 %479, %v319_v24  }
  0x83   :  { %v51_v26 = vpop.permute.xlu0 %50 }
  0x84   :  { %v61_v27 = vpop.permute.xlu1 %60 }
  0x87   :  { %v56_v28 = vpop.permute.xlu0 %55 }
  0x8b   :  { %v66_v29 = vpop.permute.xlu1 %65  ;;  %v71_v33 = vpop.permute.xlu0 %70 }
  0x8f   :  { %v76_v38 = vpop.permute.xlu1 %75  ;;  %v81_v45 = vpop.permute.xlu0 %80 }
  0x93   :  { %v86_v50 = vpop.permute.xlu1 %85  ;;  %v227_v0 = vpop.permute.xlu0 %226 }
  0x97   :  { %v232_v1 = vpop.permute.xlu1 %231  ;;  %v237_v2 = vpop.permute.xlu0 %236 }
  0x9b   :  { %v242_v6 = vpop.permute.xlu1 %241  ;;  %v323_v19 = vpop.permute.xlu0 %322 }
  0x9f   :  { %v328_v23 = vpop.permute.xlu1 %327 }
  0xdd   :  { %v445_v30 = vpop.f32.mrb[0].mxu0 }
  0xde   :  { %v182_v31 = vadd.f32 %v445_v30, %v61_v27  ;;  %v173_v32 = vpop.f32.mrb[1].mxu0 }
  0xdf   :  { %v174_v34 = vadd.f32 %v173_v32, %v51_v26  ;;  %v446_v35 = vpop.f32.mrb[2].mxu0 }
  0xe0   :  { %v185_v36 = vadd.f32 %v446_v35, %v66_v29  ;;  %v176_v37 = vpop.f32.mrb[3].mxu0  ;;  %v206_v40 = vmax.f32 %v182_v31, 0.0 }
  0xe1   :  { %v177_v39 = vadd.f32 %v176_v37, %v56_v28  ;;  %v204_v42 = vmax.f32 %v174_v34, 0.0 }
  0xe2   :  { %v207_v41 = vmax.f32 %v185_v36, 0.0 }
  0xe3   :  { %v205_v43 = vmax.f32 %v177_v39, 0.0 }
  0xe4   :  { %v217_v44 = vpack.c.bf16 %v207_v41, %v206_v40 }
  0xe5   :  { %v449_v46 = vpop.f32.mrb[4].mxu0  ;;  %v216_v47 = vpack.c.bf16 %v205_v43, %v204_v42 }
  0xe6   :  { %v198_v48 = vadd.f32 %v449_v46, %v81_v45  ;;  %v189_v49 = vpop.f32.mrb[5].mxu0 }
  0xe7   :  { %v190_v51 = vadd.f32 %v189_v49, %v71_v33  ;;  %v450_v52 = vpop.f32.mrb[6].mxu0  ;;  %451 = vmatprep.subr.bf16.mxu1 %v216_v47 }
  0xe8   :  { %v201_v53 = vadd.f32 %v450_v52, %v86_v50  ;;  %v192_v54 = vpop.f32.mrb[7].mxu0  ;;  %452 = vmatpush3.bf16.msra.mxu1 %v216_v47  ;;  %v210_v56 = vmax.f32 %v198_v48, 0.0 }
  0xe9   :  { %v193_v55 = vadd.f32 %v192_v54, %v76_v38  ;;  %453 = vmatprep.subr.bf16.mxu1 %v217_v44  ;;  %v208_v58 = vmax.f32 %v190_v51, 0.0 }
  0xea   :  { %v211_v57 = vmax.f32 %v201_v53, 0.0 }
  0xeb   :  { %v209_v59 = vmax.f32 %v193_v55, 0.0 }
  0xec   :  { %v219_v60 = vpack.c.bf16 %v211_v57, %v210_v56  ;;  %454 = vmatpush3.bf16.msra.mxu1 %v217_v44 }
  0xed   :  { %v218_v61 = vpack.c.bf16 %v209_v59, %v208_v58 }
  0xef   :  { %455 = vmatprep.subr.bf16.mxu1 %v218_v61 }
  0xf0   :  { %456 = vmatpush3.bf16.msra.mxu1 %v218_v61 }
  0xf1   :  { %457 = vmatprep.subr.bf16.mxu1 %v219_v60 }
  0xf4   :  { %458 = vmatpush3.bf16.msra.mxu1 %v219_v60 }
  0xf7   :  { %460 = vmatmul.mubr.msk.bf16.vlgmr.msra.gmra.mrb[0].mxu1 %vm254_vm3, %v487_v62 }
 0x1ca   :  { %v461_v3 = vpop.f32.mrb[0].mxu1 }
 0x1cb   :  { %v304_v4 = vadd.f32 %v461_v3, %v237_v2  ;;  %v295_v5 = vpop.f32.mrb[1].mxu1 }
 0x1cc   :  { %v296_v7 = vadd.f32 %v295_v5, %v227_v0  ;;  %v462_v8 = vpop.f32.mrb[2].mxu1 }
 0x1cd   :  { %v307_v9 = vadd.f32 %v462_v8, %v242_v6  ;;  %v298_v10 = vpop.f32.mrb[3].mxu1  ;;  %v312_v12 = vmax.f32 %v304_v4, 0.0 }
 0x1ce   :  { %v299_v11 = vadd.f32 %v298_v10, %v232_v1  ;;  %v310_v14 = vmax.f32 %v296_v7, 0.0 }
 0x1cf   :  { %v313_v13 = vmax.f32 %v307_v9, 0.0 }
 0x1d0   :  { %v311_v15 = vmax.f32 %v299_v11, 0.0 }
 0x1d1   :  { %v317_v16 = vpack.c.bf16 %v313_v13, %v312_v12 }
 0x1d2   :  { %v316_v17 = vpack.c.bf16 %v311_v15, %v310_v14 }
 0x1d4   :  { %464 = vmatpush3.bf16.msra.mxu0 %v316_v17 }
 0x1d5   :  { %465 = vmatprep.subr.bf16.mxu0 %v523_v63 }
 0x1d8   :  { %466 = vmatpush3.bf16.msra.mxu0 %v317_v16 }
 0x1db   :  { %468 = vmatmul.mubr.msk.bf16.vlgmr.msra.gmra.mrb[8].mxu0 %vm335_vm5, %v488_v18 }
 0x2ae   :  { %v373_v20 = vpop.f32.mrb[8].mxu0 }
 0x2af   :  { %v374_v21 = vadd.f32 %v373_v20, %v323_v19  ;;  %v469_v22 = vpop.f32.mrb[9].mxu0 }
 0x2b0   :  { %v376_v24 = vpop.f32.mrb[10].mxu0 }
 0x2b1   :  { %v380_v25 = vsub.f32 0.0, %v374_v21  ;;  %v377_v26 = vadd.f32 %v376_v24, %v328_v23  ;;  %v470_v27 = vpop.f32.mrb[11].mxu0 }
 0x2b3   :  { %v382_v28 = vmul.f32 1.442695, %v380_v25  ;;  %v381_v29 = vsub.f32 0.0, %v377_v26 }
 0x2b5   :  { %489 = vpow2.f32 %v382_v28  ;;  %v384_v30 = vmul.f32 1.442695, %v381_v29 }
 0x2b7   :  { %491 = vpow2.f32 %v384_v30 }
 0x2bf   :  { %v490_v31 = vpop.eup %489 }
 0x2c0   :  { %v386_v32 = vadd.f32 1.0, %v490_v31 }
 0x2c1   :  { %v492_v33 = vpop.eup %491 }
 0x2c2   :  { %493 = vrcp.f32 %v386_v32  ;;  %v387_v34 = vadd.f32 1.0, %v492_v33 }
 0x2c4   :  { %495 = vrcp.f32 %v387_v34 }
 0x2cc   :  { %v494_v35 = vpop.eup %493 }
 0x2cd   :  { %390 = vst [vmem:[#allocation2] sm:$0xff] %v494_v35 }
 0x2ce   :  { %v496_v36 = vpop.eup %495 }
 0x2cf   :  { %391 = vst [vmem:[#allocation2 + $0x8] sm:$0x3f] %v496_v36 }
 0x2d0   :  { %508 = shalt.err (!%p505_p4)
}
 0x2d1   :  { %s509_s21 = scalar_lea.hbm %s662_s7, 256 }
 0x2d2   :  { %p510_p5 = scmp.ne.s32.totalorder %s662_s7, %s509_s21  ;;  %p513_p6 = scmp.lt.u32.totalorder %s509_s21, %s662_s7 }
 0x2d4   :  { %p515_p7 = pnand %p513_p6, %p510_p5 }
 0x2d6   :  { %518 = shalt.err (!%p515_p7)
}
 0x2d7   :  { %s526_s26 = smov 128   ;;  %s527_s27 = smov 8  }
 0x2d8   :  { %403 = dma.vmem_to_hbm [thread:$0]  %s398_s17, 256, %s662_s7, [#allocation3], %s526_s26, %s526_s26, %s527_s27  }
 0x2d9   :  { %519 = dma.done.wait [#allocation3], 256  }
 0x2da   :  { %520 = vsyncadd [#allocation3], 4294967040 }
 0x2db   :  { %407 = vsyncpa [#allocation3], 1 }

</bundles_post_ra>
